<compile_context>
chip_gen: v5e
topology: v5e:2x2
jax: 0.10.0
libtpu: 0.0.40
codegen_flags: <defaults>
</compile_context>

<pallas_src>
import functools

import jax
import jax.numpy as jnp
from jax.experimental import pallas as pl
from jax.experimental.pallas import tpu as pltpu

PAD = 128  # lane width; hidden / output feature dims are zero-padded to this.


def _round_up(n, m):
    return (n + m - 1) // m * m


def dqn_kernel(x_ref, w_ref, b_ref, o_ref):
    # x_ref : (TILE_M, obs_dim)  raw observations (obs_dim == full last dim, <= 128)
    # w_ref : (3, PAD, PAD)      zero-padded weights, stored as (in_features, out_features)
    # b_ref : (3, 1, PAD)        zero-padded biases
    # o_ref : (TILE_M, PAD)      lane-dense output slab (lanes >= action_dim are 0)
    obs_dim = x_ref.shape[-1]  # static
    x = x_ref[...]
    # Layer 1: contract only the first obs_dim rows of the padded weight block (K = obs_dim).
    h = jnp.dot(x, w_ref[0, :obs_dim, :], preferred_element_type=jnp.float32) + b_ref[0]
    h = jnp.maximum(h, 0.0)
    h = jnp.dot(h, w_ref[1], preferred_element_type=jnp.float32) + b_ref[1]
    h = jnp.maximum(h, 0.0)
    out = jnp.dot(h, w_ref[2], preferred_element_type=jnp.float32) + b_ref[2]
    o_ref[...] = out.astype(o_ref.dtype)


def pack_params(params):
    """Pack (w1,b1,w2,b2,w3,b3) into one weight slab + one bias slab (zero-padded)."""
    w1, b1, w2, b2, w3, b3 = params
    layers = ((w1, b1), (w2, b2), (w3, b3))
    for w, _ in layers:
        assert w.shape[0] <= PAD and w.shape[1] <= PAD, "feature dims must be <= 128"
    w_slab = jnp.zeros((3, PAD, PAD), jnp.float32)
    b_slab = jnp.zeros((3, 1, PAD), jnp.float32)
    for i, (w, b) in enumerate(layers):
        k, n = w.shape
        w_slab = w_slab.at[i, :k, :n].set(w.astype(jnp.float32))
        b_slab = b_slab.at[i, :, :n].set(b.reshape(1, -1).astype(jnp.float32))
    return w_slab, b_slab


@functools.partial(jax.jit, static_argnames=("action_dim", "tile_m"))
def dqn_forward(x, w_slab, b_slab, *, action_dim, tile_m=1024):
    batch, obs_dim = x.shape
    assert obs_dim <= PAD and action_dim <= PAD
    x = x.astype(jnp.float32)

    # Small batches -> a single tile; large batches are software-pipelined over the grid.
    tm = min(tile_m, _round_up(batch, 8))
    grid = (pl.cdiv(batch, tm),)  # partial last block handled (masked stores)

    out = pl.pallas_call(
        dqn_kernel,
        out_shape=jax.ShapeDtypeStruct((batch, PAD), jnp.float32),
        grid=grid,
        in_specs=[
            pl.BlockSpec((tm, obs_dim), lambda i: (i, 0)),      # activations: tiled over batch
            pl.BlockSpec((3, PAD, PAD), lambda i: (0, 0, 0)),   # weights: VMEM-resident
            pl.BlockSpec((3, 1, PAD), lambda i: (0, 0, 0)),     # biases:  VMEM-resident
        ],
        out_specs=pl.BlockSpec((tm, PAD), lambda i: (i, 0)),
        compiler_params=pltpu.CompilerParams(
            dimension_semantics=("parallel",),  # shard batch tiles across TCs on v7x
        ),
    )(x, w_slab, b_slab)
    # Q-values live in the first action_dim lanes of the lane-dense output slab.
    return out[:, :action_dim]


def init_params(key, observation_dim, action_dim, units=32):
    """PyTorch-style uniform(-1/sqrt(fan_in), 1/sqrt(fan_in)) init; W stored as (in, out)."""
    def linear(k, fan_in, fan_out):
        kw, kb = jax.random.split(k)
        bound = 1.0 / jnp.sqrt(fan_in)
        w = jax.random.uniform(kw, (fan_in, fan_out), jnp.float32, -bound, bound)
        b = jax.random.uniform(kb, (1, fan_out), jnp.float32, -bound, bound)
        return w, b

    k1, k2, k3 = jax.random.split(key, 3)
    w1, b1 = linear(k1, observation_dim, units)
    w2, b2 = linear(k2, units, units)
    w3, b3 = linear(k3, units, action_dim)
    return w1, b1, w2, b2, w3, b3


def dqn_reference(x, params):
    w1, b1, w2, b2, w3, b3 = params
    h = jnp.maximum(x @ w1 + b1, 0.0)
    h = jnp.maximum(h @ w2 + b2, 0.0)
    return h @ w3 + b3


if __name__ == "__main__":
    observation_dim, action_dim, units = 8, 4, 32

    key = jax.random.PRNGKey(0)
    kx, kp, kx2 = jax.random.split(key, 3)
    params = init_params(kp, observation_dim, action_dim, units)
    w_slab, b_slab = pack_params(params)

    # Small batch (single-env inference path): one grid step.
    x = jax.random.normal(kx, (8, observation_dim), jnp.float32)
    out = jax.block_until_ready(dqn_forward(x, w_slab, b_slab, action_dim=action_dim))
    ref = dqn_reference(x, params)
    assert out.shape == (8, action_dim)
    assert jnp.allclose(out, ref, atol=1e-5, rtol=1e-5)

    # Ragged larger batch exercises the batch grid, partial blocks and the parallel axis.
    x2 = jax.random.normal(kx2, (300, observation_dim), jnp.float32)
    out2 = jax.block_until_ready(
        dqn_forward(x2, w_slab, b_slab, action_dim=action_dim, tile_m=128))
    ref2 = dqn_reference(x2, params)
    assert out2.shape == (300, action_dim)
    assert jnp.allclose(out2, ref2, atol=1e-5, rtol=1e-5)

    print("KERNEL_OK")
</pallas_src>

<mosaic_0001>
module attributes {stable_mosaic.version = 11 : i64} {
  func.func @dqn_kernel(%arg0: i32, %arg1: memref<8x8xf32, #tpu.memory_space<vmem>>, %arg2: memref<3x128x128xf32, #tpu.memory_space<vmem>>, %arg3: memref<3x1x128xf32, #tpu.memory_space<vmem>>, %arg4: memref<8x128xf32, #tpu.memory_space<vmem>>) attributes {dimension_semantics = [#tpu.dimension_semantics<parallel>], iteration_bounds = array<i64: 1>, scalar_prefetch = 0 : i64, scratch_operands = 0 : i64, tpu.core_type = #tpu.core_type<tc>, window_params = [{transform_indices = @transform_0, window_bounds = array<i64: 8, 8>}, {pipeline_mode = #tpu.pipeline_mode<synchronous>, transform_indices = @transform_1, window_bounds = array<i64: 3, 128, 128>}, {pipeline_mode = #tpu.pipeline_mode<synchronous>, transform_indices = @transform_2, window_bounds = array<i64: 3, 1, 128>}, {transform_indices = @transform_3, window_bounds = array<i64: 8, 128>}]} {
    %c0 = arith.constant 0 : index
    %c0_0 = arith.constant 0 : index
    %0 = vector.load %arg1[%c0, %c0_0] : memref<8x8xf32, #tpu.memory_space<vmem>>, vector<8x8xf32>
    %c0_1 = arith.constant 0 : index
    %c0_2 = arith.constant 0 : index
    %c0_3 = arith.constant 0 : index
    %1 = vector.load %arg2[%c0_1, %c0_2, %c0_3] : memref<3x128x128xf32, #tpu.memory_space<vmem>>, vector<1x8x128xf32>
    %2 = vector.shape_cast %1 : vector<1x8x128xf32> to vector<8x128xf32>
    %cst = arith.constant dense<0.000000e+00> : vector<8x128xf32>
    %3 = tpu.matmul %0, %2, %cst {dimension_numbers = #tpu.dot_dimension_numbers<[1], [0], [0], [1], [0, 0, 1, 1], [], []>} : vector<8x8xf32>, vector<8x128xf32>, vector<8x128xf32> -> vector<8x128xf32>
    %c0_4 = arith.constant 0 : index
    %c0_5 = arith.constant 0 : index
    %c0_6 = arith.constant 0 : index
    %4 = vector.load %arg3[%c0_4, %c0_5, %c0_6] : memref<3x1x128xf32, #tpu.memory_space<vmem>>, vector<1x1x128xf32>
    %5 = vector.shape_cast %4 : vector<1x1x128xf32> to vector<1x128xf32>
    %6 = vector.broadcast %5 : vector<1x128xf32> to vector<8x128xf32>
    %7 = arith.addf %3, %6 : vector<8x128xf32>
    %cst_7 = arith.constant 0.000000e+00 : f32
    %8 = vector.broadcast %cst_7 : f32 to vector<8x128xf32>
    %9 = arith.maximumf %7, %8 : vector<8x128xf32>
    %c1 = arith.constant 1 : index
    %c0_8 = arith.constant 0 : index
    %c0_9 = arith.constant 0 : index
    %10 = vector.load %arg2[%c1, %c0_8, %c0_9] : memref<3x128x128xf32, #tpu.memory_space<vmem>>, vector<1x128x128xf32>
    %11 = vector.shape_cast %10 : vector<1x128x128xf32> to vector<128x128xf32>
    %cst_10 = arith.constant dense<0.000000e+00> : vector<8x128xf32>
    %12 = tpu.matmul %9, %11, %cst_10 {dimension_numbers = #tpu.dot_dimension_numbers<[1], [0], [0], [1], [0, 0, 1, 1], [], []>} : vector<8x128xf32>, vector<128x128xf32>, vector<8x128xf32> -> vector<8x128xf32>
    %c1_11 = arith.constant 1 : index
    %c0_12 = arith.constant 0 : index
    %c0_13 = arith.constant 0 : index
    %13 = vector.load %arg3[%c1_11, %c0_12, %c0_13] : memref<3x1x128xf32, #tpu.memory_space<vmem>>, vector<1x1x128xf32>
    %14 = vector.shape_cast %13 : vector<1x1x128xf32> to vector<1x128xf32>
    %15 = vector.broadcast %14 : vector<1x128xf32> to vector<8x128xf32>
    %16 = arith.addf %12, %15 : vector<8x128xf32>
    %cst_14 = arith.constant 0.000000e+00 : f32
    %17 = vector.broadcast %cst_14 : f32 to vector<8x128xf32>
    %18 = arith.maximumf %16, %17 : vector<8x128xf32>
    %c2 = arith.constant 2 : index
    %c0_15 = arith.constant 0 : index
    %c0_16 = arith.constant 0 : index
    %19 = vector.load %arg2[%c2, %c0_15, %c0_16] : memref<3x128x128xf32, #tpu.memory_space<vmem>>, vector<1x128x128xf32>
    %20 = vector.shape_cast %19 : vector<1x128x128xf32> to vector<128x128xf32>
    %cst_17 = arith.constant dense<0.000000e+00> : vector<8x128xf32>
    %21 = tpu.matmul %18, %20, %cst_17 {dimension_numbers = #tpu.dot_dimension_numbers<[1], [0], [0], [1], [0, 0, 1, 1], [], []>} : vector<8x128xf32>, vector<128x128xf32>, vector<8x128xf32> -> vector<8x128xf32>
    %c2_18 = arith.constant 2 : index
    %c0_19 = arith.constant 0 : index
    %c0_20 = arith.constant 0 : index
    %22 = vector.load %arg3[%c2_18, %c0_19, %c0_20] : memref<3x1x128xf32, #tpu.memory_space<vmem>>, vector<1x1x128xf32>
    %23 = vector.shape_cast %22 : vector<1x1x128xf32> to vector<1x128xf32>
    %24 = vector.broadcast %23 : vector<1x128xf32> to vector<8x128xf32>
    %25 = arith.addf %21, %24 : vector<8x128xf32>
    %c0_21 = arith.constant 0 : index
    %c0_22 = arith.constant 0 : index
    %26 = vector.load %arg4[%c0_21, %c0_22] : memref<8x128xf32, #tpu.memory_space<vmem>>, vector<8x128xf32>
    tpu.vector_store %arg4[%c0_21, %c0_22], %25 {strides = array<i32>} : memref<8x128xf32, #tpu.memory_space<vmem>>, vector<8x128xf32>,
    return
  }
  func.func @transform_0(%arg0: i32) -> (i32, i32) {
    %c0_i32 = arith.constant 0 : i32
    %c0_i32_0 = arith.constant 0 : i32
    return %arg0, %c0_i32 : i32, i32
  }
  func.func @transform_1(%arg0: i32) -> (i32, i32, i32) {
    %c0_i32 = arith.constant 0 : i32
    %c0_i32_0 = arith.constant 0 : i32
    %c0_i32_1 = arith.constant 0 : i32
    %c0_i32_2 = arith.constant 0 : i32
    return %c0_i32, %c0_i32_0, %c0_i32_1 : i32, i32, i32
  }
  func.func @transform_2(%arg0: i32) -> (i32, i32, i32) {
    %c0_i32 = arith.constant 0 : i32
    %c0_i32_0 = arith.constant 0 : i32
    %c0_i32_1 = arith.constant 0 : i32
    %c0_i32_2 = arith.constant 0 : i32
    return %c0_i32, %c0_i32_0, %c0_i32_1 : i32, i32, i32
  }
  func.func @transform_3(%arg0: i32) -> (i32, i32) {
    %c0_i32 = arith.constant 0 : i32
    %c0_i32_0 = arith.constant 0 : i32
    return %arg0, %c0_i32 : i32, i32
  }
}

</mosaic_0001>

<bundles_post_ra>
// kernel: dqn_forward.1
= control target key start
LH: loop header
LB: loop body
LE: loop exit
PB: predicated region body
PF: predicated region fallthrough
CT: control target
= control target key end

     0   :  { %8 = vsyncpa [#allocation3], 0  ;;  %s308_s0 = inlined_call_operand.hbm [shape: f32[8,8], index: 0, kind: input, shape index: {}]   ;;  %s309_s1 = inlined_call_operand.hbm [shape: f32[3,128,128], index: 1, kind: input, shape index: {}]   ;;  %s310_s2 = inlined_call_operand.hbm [shape: f32[3,1,128], index: 2, kind: input, shape index: {}]   ;;  %s311_s3 = inlined_call_operand.vmem [shape: f32[8,128], index: 3, kind: output, shape index: {}]  }
   0x1   :  { %9 = vsyncpa [#allocation5], 0  ;;  %s25_s14 = sshll.u32 %s309_s1, 4  ;;  %s269_s15 = smov [#allocation4]   ;;  %s26_s14 = int_to_ptr.hbm [resolvable:$true] %s25_s14 }
   0x2   :  { %s27_s16 = sshll.u32 %s269_s15, 4  ;;  %s15_s19 = sshll.u32 %s308_s0, 4  ;;  %s28_s16 = int_to_ptr.vmem [resolvable:$true] %s27_s16  ;;  %s16_s19 = int_to_ptr.hbm [resolvable:$true] %s15_s19 }
   0x3   :  { %s270_s20 = smov 128   ;;  %s271_s21 = smov 8  }
   0x4   :  { %33 = dma.hbm_to_vmem [thread:$0]  %s26_s14, 6144, %s28_s16, [#allocation5], %s270_s20, %s270_s20, %s271_s21  }
   0x5   :  { %s272_s22 = smov [#allocation2]   ;;  %s38_s26 = sshll.u32 %s310_s2, 4  ;;  %s39_s26 = int_to_ptr.hbm [resolvable:$true] %s38_s26 }
   0x6   :  { %s17_s23 = sshll.u32 %s272_s22, 4  ;;  %s273_s1 = smov [#allocation6]   ;;  %s18_s23 = int_to_ptr.vmem [resolvable:$true] %s17_s23 }
   0x7   :  { %20 = dma.hbm_to_vmem [thread:$0]  %s16_s19, 128, %s18_s23, [#allocation3]  }
   0x8   :  { %s40_s27 = sshll.u32 %s273_s1, 4  ;;  %s274_s28 = smov 16   ;;  %s41_s27 = int_to_ptr.vmem [resolvable:$true] %s40_s27 }
   0x9   :  { %s275_s29 = smov 1  }
   0xa   :  { %46 = dma.hbm_to_vmem [thread:$0]  %s39_s26, 48, %s41_s27, [#allocation5], %s274_s28, %s274_s28, %s275_s29  }
   0xb   :  { %265 = dma.done.wait [#allocation3], 128  }
   0xc   :  { %266 = vsyncadd [#allocation3], 4294967168 }
   0xd   :  { %267 = dma.done.wait [#allocation5], 6192  }
   0xe   :  { %268 = vsyncadd [#allocation5], 4294961104  ;;  %vm65_vm0 = vcmask 64512   ;;  %v60_v0 = vld [vmem:[#allocation4] sm:$0xff]  ;;  %v59_v1 = vld [vmem:[#allocation2] sm:$0xff] }
   0xf   :  { %v106_v2 = vld [vmem:[#allocation4 + $0xf8] sm:$0xff]  ;;  %84 = vmatpush.msra.mxu0 %v60_v0  ;;  %v105_v3 = vld [vmem:[#allocation4 + $0xf0] sm:$0xff]  ;;  %v104_v4 = vld [vmem:[#allocation4 + $0xe8] sm:$0xff] }
  0x10   :  { %112 = vmatpush.msra.mxu1 %v106_v2  ;;  %182 = vmatmul.msk.f32.vlgmr.msra.gmra.mxu0 %vm65_vm0, %v59_v1  ;;  %v103_v5 = vld [vmem:[#allocation4 + $0xe0] sm:$0xff]  ;;  %v102_v6 = vld [vmem:[#allocation4 + $0xd8] sm:$0xff]  ;;  %v101_v7 = vld [vmem:[#allocation4 + $0xd0] sm:$0xff] }
  0x11   :  { %v100_v8 = vld [vmem:[#allocation4 + $0xc8] sm:$0xff]  ;;  %v99_v9 = vld [vmem:[#allocation4 + $0xc0] sm:$0xff]  ;;  %v98_v10 = vld [vmem:[#allocation4 + $0xb8] sm:$0xff] }
  0x12   :  { %113 = vmatpush.msra.mxu1 %v105_v3  ;;  %v97_v11 = vld [vmem:[#allocation4 + $0xb0] sm:$0xff]  ;;  %v96_v12 = vld [vmem:[#allocation4 + $0xa8] sm:$0xff]  ;;  %v95_v13 = vld [vmem:[#allocation4 + $0xa0] sm:$0xff] }
  0x13   :  { %v94_v14 = vld [vmem:[#allocation4 + $0x98] sm:$0xff]  ;;  %v93_v15 = vld [vmem:[#allocation4 + $0x90] sm:$0xff]  ;;  %v92_v16 = vld [vmem:[#allocation4 + $0x88] sm:$0xff] }
  0x14   :  { %114 = vmatpush.msra.mxu1 %v104_v4  ;;  %v91_v17 = vld [vmem:[#allocation4 + $0x80] sm:$0xff]  ;;  %v149_v18 = vld [vmem:[#allocation4 + $0x178] sm:$0xff]  ;;  %v148_v19 = vld [vmem:[#allocation4 + $0x170] sm:$0xff] }
  0x15   :  { %155 = vmatpush.msra.mxu2 %v149_v18  ;;  %v147_v20 = vld [vmem:[#allocation4 + $0x168] sm:$0xff]  ;;  %v146_v21 = vld [vmem:[#allocation4 + $0x160] sm:$0xff]  ;;  %v145_v22 = vld [vmem:[#allocation4 + $0x158] sm:$0xff] }
  0x16   :  { %115 = vmatpush.msra.mxu1 %v103_v5  ;;  %v144_v23 = vld [vmem:[#allocation4 + $0x150] sm:$0xff]  ;;  %v143_v24 = vld [vmem:[#allocation4 + $0x148] sm:$0xff]  ;;  %v142_v25 = vld [vmem:[#allocation4 + $0x140] sm:$0xff] }
  0x17   :  { %156 = vmatpush.msra.mxu2 %v148_v19  ;;  %v141_v26 = vld [vmem:[#allocation4 + $0x138] sm:$0xff]  ;;  %v140_v27 = vld [vmem:[#allocation4 + $0x130] sm:$0xff]  ;;  %v139_v28 = vld [vmem:[#allocation4 + $0x128] sm:$0xff] }
  0x18   :  { %116 = vmatpush.msra.mxu1 %v102_v6  ;;  %v138_v29 = vld [vmem:[#allocation4 + $0x120] sm:$0xff]  ;;  %v137_v30 = vld [vmem:[#allocation4 + $0x118] sm:$0xff]  ;;  %v136_v35 = vld [vmem:[#allocation4 + $0x110] sm:$0xff] }
  0x19   :  { %157 = vmatpush.msra.mxu2 %v147_v20  ;;  %v190_v31 = vld [vmem:[#allocation6] ss:$0 sm:$0xff]  ;;  %v135_v36 = vld [vmem:[#allocation4 + $0x108] sm:$0xff]  ;;  %v191_v38 = vld [vmem:[#allocation6 + $0x1] ss:$0 sm:$0xff] }
  0x1a   :  { %117 = vmatpush.msra.mxu1 %v101_v7  ;;  %v134_v37 = vld [vmem:[#allocation4 + $0x100] sm:$0xff] }
  0x1b   :  { %158 = vmatpush.msra.mxu2 %v146_v21  ;;  %v192_v42 = vld [vmem:[#allocation6 + $0x2] ss:$0 sm:$0xff] }
  0x1c   :  { %118 = vmatpush.msra.mxu1 %v100_v8 }
  0x1d   :  { %159 = vmatpush.msra.mxu2 %v145_v22 }
  0x1e   :  { %119 = vmatpush.msra.mxu1 %v99_v9 }
  0x1f   :  { %160 = vmatpush.msra.mxu2 %v144_v23 }
  0x20   :  { %120 = vmatpush.msra.mxu1 %v98_v10 }
  0x21   :  { %161 = vmatpush.msra.mxu2 %v143_v24 }
  0x22   :  { %121 = vmatpush.msra.mxu1 %v97_v11 }
  0x23   :  { %162 = vmatpush.msra.mxu2 %v142_v25 }
  0x24   :  { %122 = vmatpush.msra.mxu1 %v96_v12 }
  0x25   :  { %163 = vmatpush.msra.mxu2 %v141_v26 }
  0x26   :  { %123 = vmatpush.msra.mxu1 %v95_v13 }
  0x27   :  { %164 = vmatpush.msra.mxu2 %v140_v27 }
  0x28   :  { %124 = vmatpush.msra.mxu1 %v94_v14 }
  0x29   :  { %165 = vmatpush.msra.mxu2 %v139_v28 }
  0x2a   :  { %125 = vmatpush.msra.mxu1 %v93_v15 }
  0x2b   :  { %166 = vmatpush.msra.mxu2 %v138_v29 }
  0x2c   :  { %126 = vmatpush.msra.mxu1 %v92_v16 }
  0x2d   :  { %167 = vmatpush.msra.mxu2 %v137_v30 }
  0x2e   :  { %127 = vmatpush.msra.mxu1 %v91_v17 }
  0x2f   :  { %168 = vmatpush.msra.mxu2 %v136_v35 }
  0x31   :  { %169 = vmatpush.msra.mxu2 %v135_v36 }
  0x33   :  { %170 = vmatpush.msra.mxu2 %v134_v37 }
  0x8d   :  { %v86_v32 = vpop.f32.mrf.mxu0 }
  0x8e   :  { %v87_v33 = vadd.f32 %v190_v31, %v86_v32 }
  0x90   :  { %v89_v34 = vmax.f32 %v87_v33, 0.0 }
  0x92   :  { %128 = vmatmul.f32.vlgmr.msra.gmra.mxu1 %v89_v34 }
 0x10f   :  { %v129_v39 = vpop.f32.mrf.mxu1 }
 0x110   :  { %v130_v40 = vadd.f32 %v191_v38, %v129_v39 }
 0x112   :  { %v132_v41 = vmax.f32 %v130_v40, 0.0 }
 0x114   :  { %171 = vmatmul.f32.vlgmr.msra.gmra.mxu2 %v132_v41 }
 0x197   :  { %v172_v43 = vpop.f32.mrf.mxu2 }
 0x198   :  { %v173_v44 = vadd.f32 %v192_v42, %v172_v43 }
 0x19a   :  { %175 = vst [vmem:[%s311_s3] sm:$0xff] %v173_v44 }
 0x19b   :  { %180 = vsyncpa [#allocation3], 1 }
 0x19c   :  { %181 = vsyncpa [#allocation5], 1 }

</bundles_post_ra>
